<compile_context>
chip_gen: v6e
topology: v6e:2x2x1
jax: 0.10.0
libtpu: 0.0.40
codegen_flags: <defaults>
</compile_context>

<pallas_src>
import jax
import jax.numpy as jnp
from jax.experimental import pallas as pl
from jax.experimental.pallas import tpu as pltpu


def _lm_criterion_kernel(h_ref, w_ref, b_ref, tgt_ref, mask_ref,
                         loss_ref, num_ref, den_ref):
    # h_ref   : (TM, D)    bf16  hidden-state row tile
    # w_ref   : (D, Vp)    bf16  output projection (VMEM-resident)
    # b_ref   : (1, Vp)    f32   output bias       (VMEM-resident)
    # tgt_ref : (TM, 1)    i32   target token ids
    # mask_ref: (TM, 1)    f32   token mask
    # loss_ref: (1, 1)     f32   scalar loss output
    # num_ref : (1, 1)     f32   running numerator   (scratch)
    # den_ref : (1, 1)     f32   running denominator (scratch)
    i = pl.program_id(0)

    @pl.when(i == 0)
    def _init():
        num_ref[...] = jnp.zeros_like(num_ref)
        den_ref[...] = jnp.zeros_like(den_ref)

    # MXU matmul: bf16 operands, f32 accumulation.
    logits = jnp.dot(h_ref[...], w_ref[...],
                     preferred_element_type=jnp.float32) + b_ref[...]

    # Row-wise logsumexp in f32.
    m = jnp.max(logits, axis=-1, keepdims=True)
    lse = m + jnp.log(jnp.sum(jnp.exp(logits - m), axis=-1, keepdims=True))

    # Select the target logit per row (no logprobs / one-hot f32 temporaries).
    vocab_iota = jax.lax.broadcasted_iota(jnp.int32, logits.shape, 1)
    tgt_logit = jnp.sum(jnp.where(vocab_iota == tgt_ref[...], logits, 0.0),
                        axis=-1, keepdims=True)                      # (TM, 1)

    mask = mask_ref[...]                                             # (TM, 1)
    num_ref[...] += jnp.sum(mask * (lse - tgt_logit), keepdims=True)
    den_ref[...] += jnp.sum(mask, keepdims=True)

    @pl.when(i == pl.num_programs(0) - 1)
    def _finalize():
        # Guard den == 0 (fully padded batch) -> loss 0 instead of NaN.
        loss_ref[...] = num_ref[...] / jnp.maximum(den_ref[...], 1.0)


def language_model_criterion_pallas(hidden, w_out, b_out, targets, mask,
                                    *, tm=256):
    """hidden: (M, D) f32, w_out: (D, V), b_out: (V,), targets: (M,) i32,
    mask: (M,) f32 -> scalar loss (LanguageModelCriterion)."""
    M, D = hidden.shape
    V = w_out.shape[1]

    # --- lane-dense vocab: pad V to a multiple of 128; padded columns get
    #     bias -1e30 so they never contribute to the logsumexp or the target.
    V_pad = ((V + 127) // 128) * 128
    if V_pad != V:
        w_out = jnp.pad(w_out, ((0, 0), (0, V_pad - V)))
        b_out = jnp.pad(b_out, ((0, V_pad - V),), constant_values=-1e30)

    # --- row tiling: TM multiple of 16 (bf16 sublane packing); padded rows
    #     get mask = 0 so they contribute nothing.
    tm = min(tm, max(16, ((M + 15) // 16) * 16))
    M_pad = ((M + tm - 1) // tm) * tm
    pad = M_pad - M
    if pad:
        hidden = jnp.pad(hidden, ((0, pad), (0, 0)))
        targets = jnp.pad(targets, ((0, pad),))
        mask = jnp.pad(mask, ((0, pad),))

    grid = (M_pad // tm,)

    cost = pl.CostEstimate(
        flops=2 * M_pad * D * V_pad,
        transcendentals=M_pad * V_pad + M_pad,
        bytes_accessed=(M_pad * D * 2 + D * V_pad * 2 + V_pad * 4
                        + 2 * M_pad * 4 + 4),
    )

    out = pl.pallas_call(
        _lm_criterion_kernel,
        out_shape=jax.ShapeDtypeStruct((1, 1), jnp.float32),
        grid_spec=pltpu.PrefetchScalarGridSpec(
            num_scalar_prefetch=0,
            grid=grid,
            in_specs=[
                pl.BlockSpec((tm, D), lambda i: (i, 0)),       # hidden tile
                pl.BlockSpec((D, V_pad), lambda i: (0, 0)),    # resident W
                pl.BlockSpec((1, V_pad), lambda i: (0, 0)),    # resident bias
                pl.BlockSpec((tm, 1), lambda i: (i, 0)),       # target tile
                pl.BlockSpec((tm, 1), lambda i: (i, 0)),       # mask tile
            ],
            out_specs=pl.BlockSpec((1, 1), lambda i: (0, 0)),  # scalar loss
            scratch_shapes=[pltpu.VMEM((1, 1), jnp.float32),   # num accum
                            pltpu.VMEM((1, 1), jnp.float32)],  # den accum
        ),
        compiler_params=pltpu.CompilerParams(
            dimension_semantics=("arbitrary",),        # reduction over M tiles
            vmem_limit_bytes=64 * 1024 * 1024,
        ),
        cost_estimate=cost,
    )(
        hidden.astype(jnp.bfloat16),
        w_out.astype(jnp.bfloat16),
        b_out.reshape(1, V_pad).astype(jnp.float32),
        targets.reshape(M_pad, 1).astype(jnp.int32),
        mask.reshape(M_pad, 1).astype(jnp.float32),
    )
    return out[0, 0]


def loss_wrapper_forward(params, fc_feats, att_feats, labels, masks, att_masks):
    """Mirrors LossWrapper.forward with sc_flag=False, opt.mode != 'pair',
    opt.label_smoothing == 0.

    fc_feats : (N, F) f32
    att_feats: (N, A, F) f32    (unused by the synthetic stand-in model)
    labels   : (N, L) i32
    masks    : (N, L) f32
    att_masks: (N, A) f32       (unused by the synthetic stand-in model)
    """
    N, L = labels.shape

    # ---- synthetic model (glue: projection + embedding lookup) ----
    fc_h = fc_feats @ params["w_fc"]                      # (N, D)
    emb = params["emb"][labels[:, :-1]]                   # (N, L-1, D)
    hidden = fc_h[:, None, :] + emb                       # (N, L-1, D)

    D = hidden.shape[-1]
    M = N * (L - 1)
    hidden_flat = hidden.reshape(M, D)
    targets_flat = labels[:, 1:].reshape(M)
    mask_flat = masks[:, 1:].reshape(M)

    loss = language_model_criterion_pallas(
        hidden_flat, params["w_out"], params["b_out"], targets_flat, mask_flat
    )
    return {"loss": loss}


if __name__ == "__main__":
    # Small shapes: batch N=2, fc feature dim F=16, att regions A=4,
    # sequence length L=8, hidden D=32, vocab V=256.
    N, F, A, L, D, V = 2, 16, 4, 8, 32, 256

    key = jax.random.PRNGKey(0)
    k_fc, k_att, k_lab, k_wfc, k_emb, k_wout = jax.random.split(key, 6)

    fc_feats = jax.random.normal(k_fc, (N, F), dtype=jnp.float32)
    att_feats = jax.random.normal(k_att, (N, A, F), dtype=jnp.float32)
    labels = jax.random.randint(k_lab, (N, L), 0, V, dtype=jnp.int32)
    # mask: first 6 tokens valid, rest padded (deterministic).
    masks = (jnp.arange(L)[None, :] < 6).astype(jnp.float32).repeat(N, axis=0)
    att_masks = jnp.ones((N, A), dtype=jnp.float32)

    # Deterministic parameter init (synthetic; no checkpoint load).
    params = {
        "w_fc": jax.random.normal(k_wfc, (F, D), dtype=jnp.float32) * 0.1,
        "emb": jax.random.normal(k_emb, (V, D), dtype=jnp.float32) * 0.1,
        "w_out": jax.random.normal(k_wout, (D, V), dtype=jnp.float32) * 0.1,
        "b_out": jnp.zeros((V,), dtype=jnp.float32),
    }

    out = loss_wrapper_forward(params, fc_feats, att_feats, labels, masks, att_masks)
    jax.block_until_ready(out["loss"])
    assert jnp.isfinite(out["loss"])
    print("KERNEL_OK")
</pallas_src>

<mosaic_0001>
module attributes {stable_mosaic.version = 11 : i64} {
  func.func @_lm_criterion_kernel(%arg0: i32, %arg1: memref<16x32xbf16, #tpu.memory_space<vmem>>, %arg2: memref<32x256xbf16, #tpu.memory_space<vmem>>, %arg3: memref<1x256xf32, #tpu.memory_space<vmem>>, %arg4: memref<16x1xi32, #tpu.memory_space<vmem>>, %arg5: memref<16x1xf32, #tpu.memory_space<vmem>>, %arg6: memref<1x1xf32, #tpu.memory_space<vmem>>, %arg7: memref<1x1xf32, #tpu.memory_space<vmem>>, %arg8: memref<1x1xf32, #tpu.memory_space<vmem>>) attributes {dimension_semantics = [#tpu.dimension_semantics<arbitrary>], iteration_bounds = array<i64: 1>, scalar_prefetch = 0 : i64, scratch_operands = 2 : i64, tpu.core_type = #tpu.core_type<tc>, window_params = [{transform_indices = @transform_0, window_bounds = array<i64: 16, 32>}, {pipeline_mode = #tpu.pipeline_mode<synchronous>, transform_indices = @transform_1, window_bounds = array<i64: 32, 256>}, {pipeline_mode = #tpu.pipeline_mode<synchronous>, transform_indices = @transform_2, window_bounds = array<i64: 1, 256>}, {transform_indices = @transform_3, window_bounds = array<i64: 16, 1>}, {transform_indices = @transform_4, window_bounds = array<i64: 16, 1>}, {pipeline_mode = #tpu.pipeline_mode<synchronous>, transform_indices = @transform_5, window_bounds = array<i64: 1, 1>}]} {
    %c0_i32 = arith.constant 0 : i32
    %0 = arith.cmpi eq, %arg0, %c0_i32 : i32
    %1 = arith.extui %0 : i1 to i32
    %c0_i32_0 = arith.constant 0 : i32
    %2 = arith.cmpi ne, %1, %c0_i32_0 : i32
    scf.if %2 {
      %cst_26 = arith.constant 0.000000e+00 : f32
      %48 = vector.broadcast %cst_26 : f32 to vector<1x1xf32>
      %c0_27 = arith.constant 0 : index
      %c0_28 = arith.constant 0 : index
      %49 = vector.load %arg7[%c0_27, %c0_28] : memref<1x1xf32, #tpu.memory_space<vmem>>, vector<1x1xf32>
      tpu.vector_store %arg7[%c0_27, %c0_28], %48 {strides = array<i32>} : memref<1x1xf32, #tpu.memory_space<vmem>>, vector<1x1xf32>,
      %cst_29 = arith.constant 0.000000e+00 : f32
      %50 = vector.broadcast %cst_29 : f32 to vector<1x1xf32>
      %c0_30 = arith.constant 0 : index
      %c0_31 = arith.constant 0 : index
      %51 = vector.load %arg8[%c0_30, %c0_31] : memref<1x1xf32, #tpu.memory_space<vmem>>, vector<1x1xf32>
      tpu.vector_store %arg8[%c0_30, %c0_31], %50 {strides = array<i32>} : memref<1x1xf32, #tpu.memory_space<vmem>>, vector<1x1xf32>,
    } else {
    }
    %c0 = arith.constant 0 : index
    %c0_1 = arith.constant 0 : index
    %3 = vector.load %arg1[%c0, %c0_1] : memref<16x32xbf16, #tpu.memory_space<vmem>>, vector<16x32xbf16>
    %c0_2 = arith.constant 0 : index
    %c0_3 = arith.constant 0 : index
    %4 = vector.load %arg2[%c0_2, %c0_3] : memref<32x256xbf16, #tpu.memory_space<vmem>>, vector<32x256xbf16>
    %cst = arith.constant dense<0.000000e+00> : vector<16x256xf32>
    %5 = tpu.matmul %3, %4, %cst {dimension_numbers = #tpu.dot_dimension_numbers<[1], [0], [0], [1], [0, 0, 1, 1], [], []>} : vector<16x32xbf16>, vector<32x256xbf16>, vector<16x256xf32> -> vector<16x256xf32>
    %c0_4 = arith.constant 0 : index
    %c0_5 = arith.constant 0 : index
    %6 = vector.load %arg3[%c0_4, %c0_5] : memref<1x256xf32, #tpu.memory_space<vmem>>, vector<1x256xf32>
    %7 = vector.broadcast %6 : vector<1x256xf32> to vector<16x256xf32>
    %8 = arith.addf %5, %7 : vector<16x256xf32>
    %cst_6 = arith.constant dense<0xFF800000> : vector<16xf32>
    %9 = vector.multi_reduction <maximumf>, %8, %cst_6 [1] : vector<16x256xf32> to vector<16xf32>
    %10 = vector.shape_cast %9 : vector<16xf32> to vector<16x1xf32>
    %11 = vector.broadcast %10 : vector<16x1xf32> to vector<16x256xf32>
    %12 = arith.subf %8, %11 : vector<16x256xf32>
    %13 = math.exp %12 : vector<16x256xf32>
    %cst_7 = arith.constant dense<0.000000e+00> : vector<16xf32>
    %14 = vector.multi_reduction <add>, %13, %cst_7 [1] : vector<16x256xf32> to vector<16xf32>
    %15 = vector.shape_cast %14 : vector<16xf32> to vector<16x1xf32>
    %16 = math.log %15 : vector<16x1xf32>
    %17 = arith.addf %10, %16 : vector<16x1xf32>
    %18 = tpu.iota {dimensions = array<i32: 1>} : vector<16x256xi32>
    %c0_8 = arith.constant 0 : index
    %c0_9 = arith.constant 0 : index
    %19 = vector.load %arg4[%c0_8, %c0_9] : memref<16x1xi32, #tpu.memory_space<vmem>>, vector<16x1xi32>
    %20 = vector.broadcast %19 : vector<16x1xi32> to vector<16x256xi32>
    %21 = arith.cmpi eq, %18, %20 : vector<16x256xi32>
    %cst_10 = arith.constant 0.000000e+00 : f32
    %22 = vector.broadcast %cst_10 : f32 to vector<16x256xf32>
    %23 = arith.select %21, %8, %22 : vector<16x256xi1>, vector<16x256xf32>
    %cst_11 = arith.constant dense<0.000000e+00> : vector<16xf32>
    %24 = vector.multi_reduction <add>, %23, %cst_11 [1] : vector<16x256xf32> to vector<16xf32>
    %25 = vector.shape_cast %24 : vector<16xf32> to vector<16x1xf32>
    %c0_12 = arith.constant 0 : index
    %c0_13 = arith.constant 0 : index
    %26 = vector.load %arg5[%c0_12, %c0_13] : memref<16x1xf32, #tpu.memory_space<vmem>>, vector<16x1xf32>
    %c0_14 = arith.constant 0 : index
    %c0_15 = arith.constant 0 : index
    %27 = vector.load %arg7[%c0_14, %c0_15] : memref<1x1xf32, #tpu.memory_space<vmem>>, vector<1x1xf32>
    %28 = arith.subf %17, %25 : vector<16x1xf32>
    %29 = arith.mulf %26, %28 : vector<16x1xf32>
    %30 = vector.shape_cast %29 : vector<16x1xf32> to vector<1x16x1xf32>
    %cst_16 = arith.constant dense<0.000000e+00> : vector<1xf32>
    %31 = vector.multi_reduction <add>, %30, %cst_16 [1, 2] : vector<1x16x1xf32> to vector<1xf32>
    %32 = vector.shape_cast %31 : vector<1xf32> to vector<1x1x1xf32>
    %33 = vector.extract %32[0, 0, 0] : f32 from vector<1x1x1xf32>
    %34 = vector.broadcast %33 : f32 to vector<1x1xf32>
    %35 = arith.addf %27, %34 : vector<1x1xf32>
    %c0_17 = arith.constant 0 : index
    %c0_18 = arith.constant 0 : index
    %36 = vector.load %arg7[%c0_17, %c0_18] : memref<1x1xf32, #tpu.memory_space<vmem>>, vector<1x1xf32>
    tpu.vector_store %arg7[%c0_17, %c0_18], %35 {strides = array<i32>} : memref<1x1xf32, #tpu.memory_space<vmem>>, vector<1x1xf32>,
    %c0_19 = arith.constant 0 : index
    %c0_20 = arith.constant 0 : index
    %37 = vector.load %arg8[%c0_19, %c0_20] : memref<1x1xf32, #tpu.memory_space<vmem>>, vector<1x1xf32>
    %38 = vector.shape_cast %26 : vector<16x1xf32> to vector<1x16x1xf32>
    %cst_21 = arith.constant dense<0.000000e+00> : vector<1xf32>
    %39 = vector.multi_reduction <add>, %38, %cst_21 [1, 2] : vector<1x16x1xf32> to vector<1xf32>
    %40 = vector.shape_cast %39 : vector<1xf32> to vector<1x1x1xf32>
    %41 = vector.extract %40[0, 0, 0] : f32 from vector<1x1x1xf32>
    %42 = vector.broadcast %41 : f32 to vector<1x1xf32>
    %43 = arith.addf %37, %42 : vector<1x1xf32>
    %c0_22 = arith.constant 0 : index
    %c0_23 = arith.constant 0 : index
    %44 = vector.load %arg8[%c0_22, %c0_23] : memref<1x1xf32, #tpu.memory_space<vmem>>, vector<1x1xf32>
    tpu.vector_store %arg8[%c0_22, %c0_23], %43 {strides = array<i32>} : memref<1x1xf32, #tpu.memory_space<vmem>>, vector<1x1xf32>,
    %c0_i32_24 = arith.constant 0 : i32
    %45 = arith.cmpi eq, %arg0, %c0_i32_24 : i32
    %46 = arith.extui %45 : i1 to i32
    %c0_i32_25 = arith.constant 0 : i32
    %47 = arith.cmpi ne, %46, %c0_i32_25 : i32
    scf.if %47 {
      %c0_26 = arith.constant 0 : index
      %c0_27 = arith.constant 0 : index
      %48 = vector.load %arg7[%c0_26, %c0_27] : memref<1x1xf32, #tpu.memory_space<vmem>>, vector<1x1xf32>
      %c0_28 = arith.constant 0 : index
      %c0_29 = arith.constant 0 : index
      %49 = vector.load %arg8[%c0_28, %c0_29] : memref<1x1xf32, #tpu.memory_space<vmem>>, vector<1x1xf32>
      %cst_30 = arith.constant 1.000000e+00 : f32
      %50 = vector.broadcast %cst_30 : f32 to vector<1x1xf32>
      %51 = arith.maximumf %49, %50 : vector<1x1xf32>
      %52 = arith.divf %48, %51 : vector<1x1xf32>
      %c0_31 = arith.constant 0 : index
      %c0_32 = arith.constant 0 : index
      %53 = vector.load %arg6[%c0_31, %c0_32] : memref<1x1xf32, #tpu.memory_space<vmem>>, vector<1x1xf32>
      tpu.vector_store %arg6[%c0_31, %c0_32], %52 {strides = array<i32>} : memref<1x1xf32, #tpu.memory_space<vmem>>, vector<1x1xf32>,
    } else {
    }
    return
  }
  func.func @transform_0(%arg0: i32) -> (i32, i32) {
    %c0_i32 = arith.constant 0 : i32
    %c0_i32_0 = arith.constant 0 : i32
    return %arg0, %c0_i32 : i32, i32
  }
  func.func @transform_1(%arg0: i32) -> (i32, i32) {
    %c0_i32 = arith.constant 0 : i32
    %c0_i32_0 = arith.constant 0 : i32
    %c0_i32_1 = arith.constant 0 : i32
    return %c0_i32, %c0_i32_0 : i32, i32
  }
  func.func @transform_2(%arg0: i32) -> (i32, i32) {
    %c0_i32 = arith.constant 0 : i32
    %c0_i32_0 = arith.constant 0 : i32
    %c0_i32_1 = arith.constant 0 : i32
    return %c0_i32, %c0_i32_0 : i32, i32
  }
  func.func @transform_3(%arg0: i32) -> (i32, i32) {
    %c0_i32 = arith.constant 0 : i32
    %c0_i32_0 = arith.constant 0 : i32
    return %arg0, %c0_i32 : i32, i32
  }
  func.func @transform_4(%arg0: i32) -> (i32, i32) {
    %c0_i32 = arith.constant 0 : i32
    %c0_i32_0 = arith.constant 0 : i32
    return %arg0, %c0_i32 : i32, i32
  }
  func.func @transform_5(%arg0: i32) -> (i32, i32) {
    %c0_i32 = arith.constant 0 : i32
    %c0_i32_0 = arith.constant 0 : i32
    %c0_i32_1 = arith.constant 0 : i32
    return %c0_i32, %c0_i32_0 : i32, i32
  }
}

</mosaic_0001>

<bundles_post_ra>
// kernel: tpu_custom_call.1
= control target key start
LH: loop header
LB: loop body
LE: loop exit
PB: predicated region body
PF: predicated region fallthrough
CT: control target
= control target key end

     0   :  { %10 = vsyncpa [#allocation5], 0  ;;  %s409_s0 = inlined_call_operand.hbm [shape: bf16[16,32], index: 0, kind: input, shape index: {}]   ;;  %s410_s1 = inlined_call_operand.vmem [shape: bf16[32,256], index: 1, kind: input, shape index: {}]   ;;  %s411_s2 = inlined_call_operand.vmem [shape: f32[1,256], index: 2, kind: input, shape index: {}]   ;;  %s412_s3 = inlined_call_operand.vmem [shape: s32[16,1], index: 3, kind: input, shape index: {}]   ;;  %s413_s4 = inlined_call_operand.vmem [shape: f32[16,1], index: 4, kind: input, shape index: {}]   ;;  %s414_s5 = inlined_call_operand.hbm [shape: f32[1,1], index: 5, kind: output, shape index: {}]  }
   0x1   :  { %11 = vsyncpa [#allocation6], 0  ;;  %s335_s18 = smov [#allocation4]  }
   0x2   :  { %s17_s19 = sshll.u32 %s335_s18, 4  ;;  %s18_s19 = int_to_ptr.vmem [resolvable:$true] %s17_s19 }
   0x3   :  { %s299_s20 = scalar_lea.vmem %s18_s19, 128  ;;  %p304_p1 = scmp.lt.s32.totalorder %s18_s19, %s18_s19 }
   0x4   :  { %p300_p0 = scmp.ne.s32.totalorder %s18_s19, %s299_s20  ;;  %p305_p2 = scmp.lt.s32.totalorder %s299_s20, %s299_s20 }
   0x6   :  { %p306_p3 = por %p305_p2, %p304_p1 }
   0x8   :  { %p307_p4 = pnand %p306_p3, %p300_p0 }
   0xa   :  { %310 = shalt.err (!%p307_p4)
}
   0xb   :  { %s336_s21 = smov 64   ;;  %s337_s22 = smov 4  }
   0xc   :  { %23 = dma.hbm_to_vmem [thread:$0]  %s409_s0, 128, %s18_s19, [#allocation5], %s336_s21, %s336_s21, %s337_s22  }
   0xd   :  { %331 = dma.done.wait [#allocation5], 128  }
   0xe   :  { %332 = vsyncadd [#allocation5], 4294967168  ;;  %v338_v0 = vmov 0   ;;  %v270_v1 = vld [vmem:[%s410_s1 + $0x14] ss:$8 sps:$4 sm:$0xff]   ;;  %v166_v5 = vld [vmem:[%s412_s3] sm:$0xff]  ;;  %v51_v8 = vlaneseq }
   0xf   :  { %122 = vmatprep.mubr.bf16.mxu0 %v338_v0  ;;  %268 = vset.pattern.permute.xlu1 %v338_v0  ;;  %v272_v2 = vld [vmem:[%s410_s1 + $0x10] ss:$8 sps:$4 sm:$0xff]   ;;  %v273_v3 = vld [vmem:[%s410_s1 + $0x4] ss:$8 sps:$4 sm:$0xff]   ;;  %v275_v4 = vld [vmem:[%s410_s1] ss:$8 sps:$4 sm:$0xff]  }
  0x10   :  { %269 = vset.pattern.permute.xlu0 %v338_v0  ;;  %102 = vmatprep.subr.bf16.mxu0 %v270_v1  ;;  %v167_v6 = vld [vmem:[%s412_s3 + $0x8] sm:$0xff]  ;;  %vm86_vm0 = vcmask 261120   ;;  %v52_v9 = vshrl.u32 %v51_v8, 7  ;;  %v49_v12 = vld [vmem:[%s411_s2] sm:$0x3]  ;;  %v164_v35 = vand.u32 127, %v51_v8 }
  0x11   :  { %103 = vmatpush1.bf16.msra.mxu0 %v272_v2  ;;  %169 = vperm.xlu1 %268, %v166_v5   ;;  %v276_v7 = vld [vmem:[#allocation4] sm:$0xff]   ;;  %vm195_vm5 = vcmask 7168   ;;  %vm40_vm6 = vcmask 0   ;;  %s340_s15 = smov [#allocation7]  }
  0x12   :  { %104 = vmatprep.subr.bf16.mxu0 %v273_v3  ;;  %v53_v10 = vsub.s32 0, %v52_v9  ;;  %v57_v11 = vsub.s32 1, %v52_v9  ;;  %v165_v36 = vadd.s32 128, %v164_v35  ;;  %v188_v60 = vld [vmem:[%s413_s4] sm:$0xff]  ;;  %v189_v62 = vld [vmem:[%s413_s4 + $0x8] sm:$0xff]  ;;  %v339_v9 = vmov 0.0  }
  0x13   :  { %v213_v5 = vsel %vm195_vm5, %v188_v60, 0.0  ;;  %41 = vst.msk [vmem:[#allocation2] sm:$0x1] %vm40_vm6, %v339_v9  ;;  %42 = vst.msk [vmem:[#allocation3] sm:$0x1] %vm40_vm6, %v339_v9  ;;  %s243_s16 = sshll.u32 %s340_s15, 4  ;;  %s244_s16 = int_to_ptr.vmem [resolvable:$true] %s243_s16 }
  0x14   :  { %v54_v13 = vrot.slane %v49_v12, %v53_v10  ;;  %v58_v14 = vrot.slane %v49_v12, %v57_v11  ;;  %s311_s17 = scalar_lea.vmem %s244_s16, 16  ;;  %s315_s18 = scalar_lea.vmem %s244_s16, 32 }
  0x15   :  { %105 = vmatpush1.bf16.msra.mxu0 %v275_v4  ;;  %172 = vperm.xlu1 %268, %v167_v6   ;;  %v214_v6 = vsel %vm195_vm5, %v189_v62, 0.0  ;;  %p312_p5 = scmp.ne.s32.totalorder %s244_s16, %s311_s17  ;;  %p316_p6 = scmp.lt.s32.totalorder %s244_s16, %s244_s16 }
  0x16   :  { %v215_v8 = vadd.f32 %v214_v6, %v213_v5  ;;  %p317_p7 = scmp.lt.s32.totalorder %s315_s18, %s311_s17 }
  0x18   :  { %257 = vmatmul.mubr.msk.bf16.vlgmr.msra.gmra.mxu0 %vm86_vm0, %v276_v7  ;;  %p318_p8 = por %p317_p7, %p316_p6 }
  0x1a   :  { %p319_p9 = pnand %p318_p8, %p312_p5 }
  0x8c   :  { %v170_v37 = vpop.permute.xlu1 %169 }
  0x8d   :  { %vm175_vm1 = vcmp.eq.s32.totalorder %v165_v36, %v170_v37  ;;  %vm174_vm2 = vcmp.eq.s32.totalorder %v164_v35, %v170_v37 }
  0x90   :  { %v173_v41 = vpop.permute.xlu1 %172 }
  0x91   :  { %vm177_vm3 = vcmp.eq.s32.totalorder %v165_v36, %v173_v41  ;;  %vm176_vm4 = vcmp.eq.s32.totalorder %v164_v35, %v173_v41 }
  0xd8   :  { %v124_v15 = vpop.f32.mrf.mxu0 }
  0xd9   :  { %v125_v17 = vadd.f32 %v124_v15, %v54_v13 }
  0xda   :  { %v126_v16 = vpop.f32.mrf.mxu0 }
  0xdb   :  { %v127_v18 = vadd.f32 %v126_v16, %v58_v14  ;;  %v178_v45 = vsel %vm174_vm2, %v125_v17, 0.0 }
  0xdc   :  { %v128_v19 = vpop.f32.mrf.mxu0 }
  0xdd   :  { %v133_v20 = vmax.f32 %v125_v17, %v127_v18  ;;  %v129_v22 = vadd.f32 %v128_v19, %v54_v13  ;;  %v179_v42 = vsel %vm175_vm1, %v127_v18, 0.0 }
  0xde   :  { %v130_v21 = vpop.f32.mrf.mxu0  ;;  %v182_v46 = vadd.f32 %v179_v42, %v178_v45 }
  0xdf   :  { %v131_v23 = vadd.f32 %v130_v21, %v58_v14  ;;  %134 = vmax.xlane.f32.xlu0 %v133_v20  ;;  %v180_v49 = vsel %vm176_vm4, %v129_v22, 0.0 }
  0xe1   :  { %v136_v24 = vmax.f32 %v129_v22, %v131_v23  ;;  %v181_v48 = vsel %vm177_vm3, %v131_v23, 0.0 }
  0xe2   :  { %v185_v50 = vadd.f32 %v181_v48, %v180_v49 }
  0xe3   :  { %137 = vmax.xlane.f32.xlu0 %v136_v24  ;;  %v190_v24 = vld [vmem:[#allocation2] sm:$0x1] }
 0x168   :  { %v135_v25 = vpop.xlane.xlu0 %134 }
 0x169   :  { %v139_v26 = vsub.f32 %v125_v17, %v135_v25  ;;  %v140_v27 = vsub.f32 %v127_v18, %v135_v25 }
 0x16b   :  { %v143_v28 = vmul.f32 1.442695, %v139_v26  ;;  %v145_v29 = vmul.f32 1.442695, %v140_v27  ;;  %v212_v27 = vld [vmem:[#allocation3] sm:$0x1] }
 0x16c   :  { %v138_v30 = vpop.xlane.xlu0 %137 }
 0x16d   :  { %277 = vpow2.f32 %v143_v28  ;;  %v141_v31 = vsub.f32 %v129_v22, %v138_v30  ;;  %v142_v32 = vsub.f32 %v131_v23, %v138_v30 }
 0x16e   :  { %279 = vpow2.f32 %v145_v29 }
 0x16f   :  { %v147_v33 = vmul.f32 1.442695, %v141_v31  ;;  %v149_v34 = vmul.f32 1.442695, %v142_v32 }
 0x171   :  { %281 = vpow2.f32 %v147_v33 }
 0x172   :  { %283 = vpow2.f32 %v149_v34 }
 0x17a   :  { %v278_v38 = vpop.eup %277 }
 0x17b   :  { %v280_v39 = vpop.eup %279 }
 0x17c   :  { %v151_v40 = vadd.f32 %v280_v39, %v278_v38 }
 0x17e   :  { %v282_v43 = vpop.eup %281  ;;  %152 = vadd.xlane.f32.xlu0 %v151_v40 }
 0x17f   :  { %v284_v44 = vpop.eup %283 }
 0x180   :  { %v154_v47 = vadd.f32 %v284_v44, %v282_v43 }
 0x182   :  { %183 = vadd.xlane.f32.xlu0 %v182_v46  ;;  %155 = vadd.xlane.f32.xlu1 %v154_v47 }
 0x186   :  { %186 = vadd.xlane.f32.xlu0 %v185_v50 }
 0x207   :  { %v153_v51 = vpop.xlane.xlu0 %152 }
 0x208   :  { %285 = vlog2.f32 %v153_v51 }
 0x20b   :  { %v156_v52 = vpop.xlane.xlu1 %155  ;;  %v184_v55 = vpop.xlane.xlu0 %183 }
 0x20c   :  { %287 = vlog2.f32 %v156_v52 }
 0x20f   :  { %v187_v63 = vpop.xlane.xlu0 %186 }
 0x215   :  { %v286_v53 = vpop.eup %285 }
 0x216   :  { %v158_v54 = vmul.f32 0.6931472, %v286_v53 }
 0x218   :  { %v161_v56 = vadd.f32 %v158_v54, %v135_v25 }
 0x219   :  { %v288_v57 = vpop.eup %287 }
 0x21a   :  { %v160_v58 = vmul.f32 0.6931472, %v288_v57  ;;  %v191_v59 = vsub.f32 %v161_v56, %v184_v55 }
 0x21c   :  { %v162_v61 = vadd.f32 %v160_v58, %v138_v30  ;;  %v193_v0 = vmul.f32 %v191_v59, %v188_v60 }
 0x21e   :  { %v192_v1 = vsub.f32 %v162_v61, %v187_v63  ;;  %v196_v3 = vsel %vm195_vm5, %v193_v0, 0.0 }
 0x220   :  { %v194_v2 = vmul.f32 %v192_v1, %v189_v62 }
 0x222   :  { %v197_v4 = vsel %vm195_vm5, %v194_v2, 0.0 }
 0x223   :  { %v198_v7 = vadd.f32 %v197_v4, %v196_v3 }
 0x225   :  { %199 = vadd.xlane.f32.xlu0 %v198_v7 }
 0x229   :  { %216 = vadd.xlane.f32.xlu0 %v215_v8 }
 0x2ae   :  { %v200_v10 = vpop.xlane.xlu0 %199 }
 0x2af   :  { %v201_v11 = vrot.slane %v200_v10, 4 }
 0x2b1   :  { %v202_v12 = vadd.f32 %v201_v11, %v200_v10 }
 0x2b2   :  { %v217_v13 = vpop.xlane.xlu0 %216 }
 0x2b3   :  { %v203_v14 = vrot.slane %v202_v12, 2  ;;  %v218_v15 = vrot.slane %v217_v13, 4 }
 0x2b5   :  { %v219_v16 = vadd.f32 %v218_v15, %v217_v13  ;;  %v204_v17 = vadd.f32 %v203_v14, %v202_v12 }
 0x2b7   :  { %v220_v18 = vrot.slane %v219_v16, 2  ;;  %v205_v19 = vrot.slane %v204_v17, 1 }
 0x2b9   :  { %v221_v20 = vadd.f32 %v220_v18, %v219_v16  ;;  %v206_v21 = vadd.f32 %v205_v19, %v204_v17 }
 0x2bb   :  { %258 = vpush %v206_v21  ;;  %v222_v22 = vrot.slane %v221_v20, 1 }
 0x2bd   :  { %v223_v23 = vadd.f32 %v222_v22, %v221_v20 }
 0x2bf   :  { %260 = vpush %v223_v23 }
 0x2ec   :  { %s259_s4 = spop %258 }
 0x2ed   :  { %v208_v25 = vstv %s259_s4 }
 0x2ee   :  { %v209_v26 = vadd.f32 %v208_v25, %v190_v24 }
 0x2f0   :  { %211 = vst.msk [vmem:[#allocation2] sm:$0x1] %vm40_vm6, %v209_v26  ;;  %s261_s14 = spop %260 }
 0x2f1   :  { %v225_v28 = vstv %s261_s14 }
 0x2f2   :  { %v226_v29 = vadd.f32 %v225_v28, %v212_v27 }
 0x2f4   :  { %227 = vst.msk [vmem:[#allocation3] sm:$0x1] %vm40_vm6, %v226_v29 }
 0x2f7   :  { %v231_v33 = vld [vmem:[#allocation2] sm:$0x1] }
 0x2fb   :  { %v232_v30 = vld [vmem:[#allocation3] sm:$0x1] }
 0x2fc   :  { %v233_v31 = vmax.f32 %v232_v30, 1.0 }
 0x2fe   :  { %289 = vrcp.f32 %v233_v31 }
 0x30b   :  { %v290_v32 = vpop.eup %289 }
 0x30c   :  { %v235_v34 = vmul.f32 %v290_v32, %v231_v33 }
 0x30e   :  { %236 = vst.msk [vmem:[#allocation7] sm:$0x1] %vm40_vm6, %v235_v34 }
 0x30f   :  { %322 = shalt.err (!%p319_p9)
}
 0x310   :  { %246 = dma.vmem_to_hbm [thread:$0]  %s244_s16, 16, %s414_s5, [#allocation6]  }
 0x311   :  { %333 = dma.done.wait [#allocation6], 16  }
 0x312   :  { %334 = vsyncadd [#allocation6], 4294967280 }
 0x313   :  { %250 = vsyncpa [#allocation5], 1 }
 0x314   :  { %251 = vsyncpa [#allocation6], 1 }

</bundles_post_ra>
